<compile_context>
chip_gen: v6e
topology: v6e:2x2x1
jax: 0.10.0
libtpu: 0.0.40
codegen_flags: <defaults>
</compile_context>

<pallas_src>
import numpy as np
import jax
import jax.numpy as jnp
from jax.experimental import pallas as pl
from jax.experimental.pallas import tpu as pltpu

# ----------------------- configuration (mirrors __init__) -------------------
INPUT_SIZE = 8
HIDDEN_SIZES = (32, 32)            # create_mlp hidden layers, tanh activations
HIDDEN = HIDDEN_SIZES[-1]
OUTPUT_SIZE = 64
BUMP_INDS = ((8, 24), (36, 52))
TROUGH_IND = (20, 44)
BASE_K = 3                         # baseline_kernel_size
BUMP_K = 3                         # bump_kernel_size
NORM_FIX = 0.1

BATCH = 16
OUT_PAD = 128                      # lane-dense padded output width

# -------- packed head-output lane layout (the single (32,256) head matmul) ---
N_HEADS_OUT = 256
BASE_OFF, BASE_N = 0, OUTPUT_SIZE + BASE_K - 1          # lanes [0,66): baseline z
NORM_LANE = 66                                          # norm z
AMP_LANES = (67, 68, 69)                                # amp z of the 3 heads
MONO_OFF = 128                                          # monotonic z block (tile aligned)
HEAD_N = (BUMP_INDS[0][1] - BUMP_INDS[0][0] + BUMP_K - 1,   # 18
          BUMP_INDS[1][1] - BUMP_INDS[1][0] + BUMP_K - 1,   # 18
          TROUGH_IND[1] - TROUGH_IND[0] + BASE_K - 1)       # 26
INC_OFF = (0, 18, 36)
DEC_OFF = (64, 82, 100)            # = INC_OFF + 64 -> dec aligns to inc by slicing
HEAD_K = (BUMP_K, BUMP_K, BASE_K)
HEAD_PLACE = (BUMP_INDS[0][0], BUMP_INDS[1][0], TROUGH_IND[0])
HEAD_SIGN = (1.0, 1.0, -1.0)       # trough is subtracted

# TBIG output column blocks (all 128-lane aligned); 512 columns total.
TB_BASE, TB_AMP, TB_CUM, TB_DEN = 0, 128, 256, 384
TBIG_COLS = 512
BSUM_DEN_LANE = 63                 # spare DEN lane: sum of baseline softplus

# --------------- single lane-dense parameter slab (one DMA) ------------------
ROW_WH = 0          # rows [0,32)   cols [0,256): packed head weight (32,256)
ROW_BH = 32         # row 32        cols [0,256): packed head bias
ROW_B1 = 33         # row 33        cols [0,32) : MLP bias 1
ROW_B2 = 34         # row 34        cols [0,32) : MLP bias 2
ROW_W1 = 40         # rows [40,48)  cols [0,32) : MLP weight 1 (8,32)
ROW_W2 = 48         # rows [48,80)  cols [0,32) : MLP weight 2 (32,32)
PSLAB_ROWS, PSLAB_COLS = 80, 256


def _softplus(x):
    return jnp.maximum(x, 0.0) + jnp.log(1.0 + jnp.exp(-jnp.abs(x)))


# ------------------- host-side constant operator construction ----------------
def _np_tri(n):                      # x @ tri == cumsum(x)
    return np.triu(np.ones((n, n), np.float32))


def _np_band(n_in, k):               # x @ band == width-k moving average (valid)
    n_out = n_in - k + 1
    r = np.arange(n_in)[:, None]
    c = np.arange(n_out)[None, :]
    return (((r >= c) & (r < c + k)).astype(np.float32)) / float(k)


def _np_place(n, idx_b, width):      # x @ place == write x into cols [idx_b, idx_b+n)
    m = np.zeros((n, width), np.float32)
    m[np.arange(n), idx_b + np.arange(n)] = 1.0
    return m


def build_constants():
    """TBIG (256,512) fused projection and FUSED (64,128) smooth+place (numpy f32)."""
    T = np.zeros((N_HEADS_OUT, TBIG_COLS), np.float32)

    # baseline numerator: sp_base @ (1 - TRI@BAND) == S - smooth(cumsum(sp_base))
    tri_band = _np_tri(BASE_N) @ _np_band(BASE_N, BASE_K)              # (66,64)
    T[BASE_OFF:BASE_OFF + BASE_N, TB_BASE:TB_BASE + OUTPUT_SIZE] = 1.0 - tri_band

    # amp broadcast onto each head's "inc" lanes
    for h in range(3):
        T[AMP_LANES[h], TB_AMP + INC_OFF[h]:TB_AMP + INC_OFF[h] + HEAD_N[h]] = 1.0

    # block-diagonal cumsum + per-block sums (both inc and dec blocks)
    for off, n in list(zip(INC_OFF, HEAD_N)) + list(zip(DEC_OFF, HEAD_N)):
        T[MONO_OFF + off:MONO_OFF + off + n, TB_CUM + off:TB_CUM + off + n] = _np_tri(n)
        T[MONO_OFF + off:MONO_OFF + off + n, TB_DEN + off:TB_DEN + off + n] = 1.0

    # baseline softplus sum into one spare DEN lane (replaces the old 128-wide BSUM block)
    T[BASE_OFF:BASE_OFF + BASE_N, TB_DEN + BSUM_DEN_LANE] = 1.0

    # FUSED: per-head Smooth(k) then placement into the 64 output cols, sign folded.
    F = np.zeros((OUTPUT_SIZE, OUT_PAD), np.float32)
    for h in range(3):
        n, k = HEAD_N[h], HEAD_K[h]
        bp = _np_band(n, k) @ _np_place(n - k + 1, HEAD_PLACE[h], OUTPUT_SIZE)
        F[INC_OFF[h]:INC_OFF[h] + n, 0:OUTPUT_SIZE] = HEAD_SIGN[h] * bp
    return T, F


# ------------------------------- Pallas kernel -------------------------------
def make_kernel(mxu_dtype):
    f32 = jnp.float32

    def kernel(x_ref, pslab_ref, tbig_ref, fused_ref, o_ref):
        # packed params: static slices of one lane-dense slab (single DMA)
        w1 = pslab_ref[ROW_W1:ROW_W1 + INPUT_SIZE, 0:HIDDEN]
        w2 = pslab_ref[ROW_W2:ROW_W2 + HIDDEN, 0:HIDDEN]
        wh = pslab_ref[ROW_WH:ROW_WH + HIDDEN, :]
        b1 = pslab_ref[ROW_B1:ROW_B1 + 1, 0:HIDDEN].astype(f32)
        b2 = pslab_ref[ROW_B2:ROW_B2 + 1, 0:HIDDEN].astype(f32)
        bh = pslab_ref[ROW_BH:ROW_BH + 1, :].astype(f32)

        # MLP: bf16/f32 operands at the MXU, f32 accumulation + f32 element-wise math
        x = x_ref[...].astype(mxu_dtype)
        h = jnp.tanh(jnp.dot(x, w1, preferred_element_type=f32) + b1)
        h = jnp.tanh(jnp.dot(h.astype(mxu_dtype), w2, preferred_element_type=f32) + b2)

        # all 11 post-MLP linear heads in ONE matmul, then one softplus
        z = jnp.dot(h.astype(mxu_dtype), wh, preferred_element_type=f32) + bh   # (B,256)
        sp = _softplus(z)
        normv = sp[:, NORM_LANE:NORM_LANE + 1]                                   # (B,1)

        # one fused constant projection: smoothed baseline numerator, amp broadcast,
        # block-diagonal cumsums, per-block sums, baseline-sum lane.
        q = jnp.dot(sp.astype(mxu_dtype), tbig_ref[...],
                    preferred_element_type=f32)                                  # (B,512)
        base_num = q[:, TB_BASE:TB_BASE + 128]      # S - smooth(cumsum); 0 beyond col 64
        amp_b    = q[:, TB_AMP:TB_AMP + 128]        # amp on inc lanes, 0 elsewhere
        cum      = q[:, TB_CUM:TB_CUM + 128]        # cumsum(softplus(mono z)) per block
        den      = q[:, TB_DEN:TB_DEN + 128]        # per-block sums (== max of cumsum)
        base_sum = den[:, BSUM_DEN_LANE:BSUM_DEN_LANE + 1]                       # (B,1)

        # monotonic curves: cumsum / sum (1e-12 guards the structurally-zero pad lanes)
        c = cum / jnp.maximum(den, 1e-12)
        c_inc = c[:, :OUTPUT_SIZE]                  # increasing curves on lanes 0..63
        c_dec = c[:, OUTPUT_SIZE:]                  # decreasing-block curves, aligned by slice
        u = amp_b[:, :OUTPUT_SIZE] * c_inc * (1.0 - c_dec)                       # (B,64)

        # baseline + placed/smoothed/signed bump & trough contributions
        y = base_num / jnp.maximum(base_sum, 1e-12)
        y = y + jnp.dot(u.astype(mxu_dtype), fused_ref[...],
                        preferred_element_type=f32)                              # (B,128)

        # lanes >= 64 of y are exactly zero, so the 128-lane sum is the 64-lane sum
        mean = jnp.sum(y, axis=-1, keepdims=True) * (1.0 / OUTPUT_SIZE)
        o_ref[...] = y * normv / (mean + NORM_FIX)

    return kernel


def _pick_tile_b(batch):
    # Small batches: one grid step (avoid duplicating constant work per step).
    # Large batches: <=256-row tiles -> >=2 "parallel" steps so v7x's two
    # TensorCores both get work (megacore sharding of the batch axis).
    if batch <= 256:
        return batch
    for t in (256, 128, 64, 32, 16, 8):
        if batch % t == 0:
            return t
    return batch


def attenuation_curve(x, packed, tile_b=None):
    """Returns the lane-dense padded output (B, 128); columns [:, :64] are the curve,
    columns [64:] are structurally zero (slice at the consumer to avoid an extra copy)."""
    pslab, tbig, fused = packed
    mxu_dtype = pslab.dtype
    batch = x.shape[0]
    if tile_b is None:
        tile_b = _pick_tile_b(batch)
    assert batch % tile_b == 0 and (tile_b == batch or tile_b % 8 == 0)

    in_specs = [
        pl.BlockSpec((tile_b, INPUT_SIZE), lambda i: (i, 0)),
        pl.BlockSpec(pslab.shape, lambda i: (0, 0)),
        pl.BlockSpec(tbig.shape, lambda i: (0, 0)),
        pl.BlockSpec(fused.shape, lambda i: (0, 0)),
    ]
    out_specs = pl.BlockSpec((tile_b, OUT_PAD), lambda i: (i, 0))

    return pl.pallas_call(
        make_kernel(mxu_dtype),
        out_shape=jax.ShapeDtypeStruct((batch, OUT_PAD), jnp.float32),
        grid=(batch // tile_b,),
        in_specs=in_specs,
        out_specs=out_specs,
        compiler_params=pltpu.CompilerParams(dimension_semantics=("parallel",)),
    )(x, pslab, tbig, fused)


# --------------------------- deterministic parameters ------------------------
def _linear_params(key, fan_in, fan_out):
    kw, kb = jax.random.split(key)
    bound = 1.0 / float(fan_in) ** 0.5
    w = jax.random.uniform(kw, (fan_in, fan_out), jnp.float32, -bound, bound)
    b = jax.random.uniform(kb, (1, fan_out), jnp.float32, -bound, bound)
    return w, b


def init_params(key):
    keys = jax.random.split(key, 16)
    p = {}
    p["w1"], p["b1"] = _linear_params(keys[0], INPUT_SIZE, HIDDEN_SIZES[0])
    p["w2"], p["b2"] = _linear_params(keys[1], HIDDEN_SIZES[0], HIDDEN_SIZES[1])
    p["wn"], p["bn"] = _linear_params(keys[2], HIDDEN, 1)
    p["wb"], p["bb"] = _linear_params(keys[3], HIDDEN, BASE_N)
    ki = 4
    for h in range(3):                               # heads 0,1 = bumps, 2 = trough
        n = HEAD_N[h]
        p[f"wi{h}"], p[f"bi{h}"] = _linear_params(keys[ki], HIDDEN, n); ki += 1
        p[f"wd{h}"], p[f"bd{h}"] = _linear_params(keys[ki], HIDDEN, n); ki += 1
        p[f"wa{h}"], p[f"ba{h}"] = _linear_params(keys[ki], HIDDEN, 1); ki += 1
    return p


def pack_params(p, dtype=jnp.bfloat16):
    """One lane-dense (80,256) param slab + the two fused constant operators."""
    # packed post-MLP heads: (32,256) weight + (256,) bias
    W = np.zeros((HIDDEN, N_HEADS_OUT), np.float32)
    B = np.zeros((N_HEADS_OUT,), np.float32)
    W[:, BASE_OFF:BASE_OFF + BASE_N] = np.asarray(p["wb"])
    B[BASE_OFF:BASE_OFF + BASE_N] = np.asarray(p["bb"])[0]
    W[:, NORM_LANE] = np.asarray(p["wn"])[:, 0]
    B[NORM_LANE] = np.asarray(p["bn"])[0, 0]
    for h in range(3):
        n = HEAD_N[h]
        W[:, AMP_LANES[h]] = np.asarray(p[f"wa{h}"])[:, 0]
        B[AMP_LANES[h]] = np.asarray(p[f"ba{h}"])[0, 0]
        io, do = MONO_OFF + INC_OFF[h], MONO_OFF + DEC_OFF[h]
        W[:, io:io + n] = np.asarray(p[f"wi{h}"]); B[io:io + n] = np.asarray(p[f"bi{h}"])[0]
        W[:, do:do + n] = np.asarray(p[f"wd{h}"]); B[do:do + n] = np.asarray(p[f"bd{h}"])[0]

    S = np.zeros((PSLAB_ROWS, PSLAB_COLS), np.float32)
    S[ROW_WH:ROW_WH + HIDDEN, :] = W
    S[ROW_BH, :] = B
    S[ROW_B1, 0:HIDDEN] = np.asarray(p["b1"])[0]
    S[ROW_B2, 0:HIDDEN] = np.asarray(p["b2"])[0]
    S[ROW_W1:ROW_W1 + INPUT_SIZE, 0:HIDDEN] = np.asarray(p["w1"])
    S[ROW_W2:ROW_W2 + HIDDEN, 0:HIDDEN] = np.asarray(p["w2"])

    T, F = build_constants()
    return (jnp.asarray(S, dtype), jnp.asarray(T, dtype), jnp.asarray(F, dtype))


# ------------------------ pure-JAX reference (exact ops) ----------------------
def _monotonic_ref(z, increase):
    c = jnp.cumsum(_softplus(z), axis=-1)
    c = c / jnp.max(c, axis=-1, keepdims=True)
    return c if increase else 1.0 - c


def _smooth_ref(x, k):
    if k == 1:
        return x
    n_out = x.shape[-1] - k + 1
    return sum(x[:, i:i + n_out] for i in range(k)) / float(k)


def _unimodal_ref(h, wi, bi, wd, bd, wa, ba):
    inc = _monotonic_ref(h @ wi + bi, True)
    dec = _monotonic_ref(h @ wd + bd, False)
    amp = _softplus(h @ wa + ba)
    return amp * inc * dec


def reference_forward(x, p):
    h = jnp.tanh(x @ p["w1"] + p["b1"])
    h = jnp.tanh(h @ p["w2"] + p["b2"])
    normv = _softplus(h @ p["wn"] + p["bn"])
    y = _smooth_ref(_monotonic_ref(h @ p["wb"] + p["bb"], False), BASE_K)
    for hd, (idx_b, idx_e) in enumerate(BUMP_INDS):
        seg = _smooth_ref(_unimodal_ref(h, p[f"wi{hd}"], p[f"bi{hd}"],
                                        p[f"wd{hd}"], p[f"bd{hd}"],
                                        p[f"wa{hd}"], p[f"ba{hd}"]), BUMP_K)
        y = y.at[:, idx_b:idx_e].add(seg)
    seg = _smooth_ref(_unimodal_ref(h, p["wi2"], p["bi2"], p["wd2"], p["bd2"],
                                    p["wa2"], p["ba2"]), BASE_K)
    y = y.at[:, TROUGH_IND[0]:TROUGH_IND[1]].add(-seg)
    mean = jnp.mean(y, axis=-1, keepdims=True)
    return y * normv / (mean + NORM_FIX)


# ------------------------------------ main -----------------------------------
if __name__ == "__main__":
    key = jax.random.PRNGKey(0)
    kx, kp = jax.random.split(key)
    x_in = jax.random.normal(kx, (BATCH, INPUT_SIZE), jnp.float32)
    p = init_params(kp)
    y_ref = reference_forward(x_in, p)

    # f32-MXU configuration: tight(ish) check of the fused-operator restructuring.
    # (Observed error is ~1e-5 at full precision; the bound is kept conservative so
    #  the check is robust across MXU f32-emulation precision modes.)
    y_pad32 = jax.block_until_ready(attenuation_curve(x_in, pack_params(p, jnp.float32)))
    y32 = y_pad32[:, :OUTPUT_SIZE]                    # consumer-side slice of padded lanes
    assert y32.shape == (BATCH, OUTPUT_SIZE)
    err32 = float(jnp.max(jnp.abs(y32 - y_ref)))
    assert jnp.allclose(y32, y_ref, atol=2e-2, rtol=2e-2), f"f32 max_err={err32}"

    # bf16-at-MXU configuration (perf default per review): looser numeric check.
    y_pad16 = jax.block_until_ready(attenuation_curve(x_in, pack_params(p, jnp.bfloat16)))
    y16 = y_pad16[:, :OUTPUT_SIZE]
    err16 = float(jnp.max(jnp.abs(y16 - y_ref)))
    assert jnp.allclose(y16, y_ref, atol=5e-2, rtol=5e-2), f"bf16 max_err={err16}"

    print("KERNEL_OK")
</pallas_src>

<mosaic_0001>
module attributes {stable_mosaic.version = 11 : i64} {
  func.func @kernel(%arg0: i32, %arg1: memref<16x8xf32, #tpu.memory_space<vmem>>, %arg2: memref<80x256xf32, #tpu.memory_space<vmem>>, %arg3: memref<256x512xf32, #tpu.memory_space<vmem>>, %arg4: memref<64x128xf32, #tpu.memory_space<vmem>>, %arg5: memref<16x128xf32, #tpu.memory_space<vmem>>) attributes {dimension_semantics = [#tpu.dimension_semantics<parallel>], iteration_bounds = array<i64: 1>, scalar_prefetch = 0 : i64, scratch_operands = 0 : i64, tpu.core_type = #tpu.core_type<tc>, window_params = [{transform_indices = @transform_0, window_bounds = array<i64: 16, 8>}, {pipeline_mode = #tpu.pipeline_mode<synchronous>, transform_indices = @transform_1, window_bounds = array<i64: 80, 256>}, {pipeline_mode = #tpu.pipeline_mode<synchronous>, transform_indices = @transform_2, window_bounds = array<i64: 256, 512>}, {pipeline_mode = #tpu.pipeline_mode<synchronous>, transform_indices = @transform_3, window_bounds = array<i64: 64, 128>}, {transform_indices = @transform_4, window_bounds = array<i64: 16, 128>}]} {
    %c40 = arith.constant 40 : index
    %c0 = arith.constant 0 : index
    %0 = vector.load %arg2[%c40, %c0] : memref<80x256xf32, #tpu.memory_space<vmem>>, vector<8x32xf32>
    %c48 = arith.constant 48 : index
    %c0_0 = arith.constant 0 : index
    %1 = vector.load %arg2[%c48, %c0_0] : memref<80x256xf32, #tpu.memory_space<vmem>>, vector<32x32xf32>
    %c0_1 = arith.constant 0 : index
    %c0_2 = arith.constant 0 : index
    %2 = vector.load %arg2[%c0_1, %c0_2] : memref<80x256xf32, #tpu.memory_space<vmem>>, vector<32x256xf32>
    %c33 = arith.constant 33 : index
    %c0_3 = arith.constant 0 : index
    %3 = vector.load %arg2[%c33, %c0_3] : memref<80x256xf32, #tpu.memory_space<vmem>>, vector<1x32xf32>
    %c34 = arith.constant 34 : index
    %c0_4 = arith.constant 0 : index
    %4 = vector.load %arg2[%c34, %c0_4] : memref<80x256xf32, #tpu.memory_space<vmem>>, vector<1x32xf32>
    %c32 = arith.constant 32 : index
    %c0_5 = arith.constant 0 : index
    %5 = vector.load %arg2[%c32, %c0_5] : memref<80x256xf32, #tpu.memory_space<vmem>>, vector<1x256xf32>
    %c0_6 = arith.constant 0 : index
    %c0_7 = arith.constant 0 : index
    %6 = vector.load %arg1[%c0_6, %c0_7] : memref<16x8xf32, #tpu.memory_space<vmem>>, vector<16x8xf32>
    %cst = arith.constant dense<0.000000e+00> : vector<16x32xf32>
    %7 = tpu.matmul %6, %0, %cst {dimension_numbers = #tpu.dot_dimension_numbers<[1], [0], [0], [1], [0, 0, 1, 1], [], []>} : vector<16x8xf32>, vector<8x32xf32>, vector<16x32xf32> -> vector<16x32xf32>
    %8 = vector.broadcast %3 : vector<1x32xf32> to vector<16x32xf32>
    %9 = arith.addf %7, %8 : vector<16x32xf32>
    %10 = math.tanh %9 : vector<16x32xf32>
    %cst_8 = arith.constant dense<0.000000e+00> : vector<16x32xf32>
    %11 = tpu.matmul %10, %1, %cst_8 {dimension_numbers = #tpu.dot_dimension_numbers<[1], [0], [0], [1], [0, 0, 1, 1], [], []>} : vector<16x32xf32>, vector<32x32xf32>, vector<16x32xf32> -> vector<16x32xf32>
    %12 = vector.broadcast %4 : vector<1x32xf32> to vector<16x32xf32>
    %13 = arith.addf %11, %12 : vector<16x32xf32>
    %14 = math.tanh %13 : vector<16x32xf32>
    %cst_9 = arith.constant dense<0.000000e+00> : vector<16x256xf32>
    %15 = tpu.matmul %14, %2, %cst_9 {dimension_numbers = #tpu.dot_dimension_numbers<[1], [0], [0], [1], [0, 0, 1, 1], [], []>} : vector<16x32xf32>, vector<32x256xf32>, vector<16x256xf32> -> vector<16x256xf32>
    %16 = vector.broadcast %5 : vector<1x256xf32> to vector<16x256xf32>
    %17 = arith.addf %15, %16 : vector<16x256xf32>
    %cst_10 = arith.constant 0.000000e+00 : f32
    %18 = vector.broadcast %cst_10 : f32 to vector<16x256xf32>
    %19 = arith.maximumf %17, %18 : vector<16x256xf32>
    %20 = math.absf %17 : vector<16x256xf32>
    %cst_11 = arith.constant 0.000000e+00 : f32
    %21 = vector.broadcast %cst_11 : f32 to vector<16x256xf32>
    %22 = arith.subf %21, %20 : vector<16x256xf32>
    %23 = math.exp %22 : vector<16x256xf32>
    %cst_12 = arith.constant 1.000000e+00 : f32
    %24 = vector.broadcast %cst_12 : f32 to vector<16x256xf32>
    %25 = arith.addf %24, %23 : vector<16x256xf32>
    %26 = math.log %25 : vector<16x256xf32>
    %27 = arith.addf %19, %26 : vector<16x256xf32>
    %28 = vector.extract_strided_slice %27 {offsets = [0, 66], sizes = [16, 1], strides = [1, 1]} : vector<16x256xf32> to vector<16x1xf32>
    %c0_13 = arith.constant 0 : index
    %c0_14 = arith.constant 0 : index
    %29 = vector.load %arg3[%c0_13, %c0_14] : memref<256x512xf32, #tpu.memory_space<vmem>>, vector<256x512xf32>
    %cst_15 = arith.constant dense<0.000000e+00> : vector<16x512xf32>
    %30 = tpu.matmul %27, %29, %cst_15 {dimension_numbers = #tpu.dot_dimension_numbers<[1], [0], [0], [1], [0, 0, 1, 1], [], []>} : vector<16x256xf32>, vector<256x512xf32>, vector<16x512xf32> -> vector<16x512xf32>
    %31 = vector.extract_strided_slice %30 {offsets = [0, 0], sizes = [16, 128], strides = [1, 1]} : vector<16x512xf32> to vector<16x128xf32>
    %32 = vector.extract_strided_slice %30 {offsets = [0, 128], sizes = [16, 128], strides = [1, 1]} : vector<16x512xf32> to vector<16x128xf32>
    %33 = vector.extract_strided_slice %30 {offsets = [0, 256], sizes = [16, 128], strides = [1, 1]} : vector<16x512xf32> to vector<16x128xf32>
    %34 = vector.extract_strided_slice %30 {offsets = [0, 384], sizes = [16, 128], strides = [1, 1]} : vector<16x512xf32> to vector<16x128xf32>
    %35 = vector.extract_strided_slice %34 {offsets = [0, 63], sizes = [16, 1], strides = [1, 1]} : vector<16x128xf32> to vector<16x1xf32>
    %cst_16 = arith.constant 9.99999996E-13 : f32
    %36 = vector.broadcast %cst_16 : f32 to vector<16x128xf32>
    %37 = arith.maximumf %34, %36 : vector<16x128xf32>
    %38 = arith.divf %33, %37 : vector<16x128xf32>
    %39 = vector.extract_strided_slice %38 {offsets = [0, 0], sizes = [16, 64], strides = [1, 1]} : vector<16x128xf32> to vector<16x64xf32>
    %40 = vector.extract_strided_slice %38 {offsets = [0, 64], sizes = [16, 64], strides = [1, 1]} : vector<16x128xf32> to vector<16x64xf32>
    %41 = vector.extract_strided_slice %32 {offsets = [0, 0], sizes = [16, 64], strides = [1, 1]} : vector<16x128xf32> to vector<16x64xf32>
    %42 = arith.mulf %41, %39 : vector<16x64xf32>
    %cst_17 = arith.constant 1.000000e+00 : f32
    %43 = vector.broadcast %cst_17 : f32 to vector<16x64xf32>
    %44 = arith.subf %43, %40 : vector<16x64xf32>
    %45 = arith.mulf %42, %44 : vector<16x64xf32>
    %cst_18 = arith.constant 9.99999996E-13 : f32
    %46 = vector.broadcast %cst_18 : f32 to vector<16x1xf32>
    %47 = arith.maximumf %35, %46 : vector<16x1xf32>
    %48 = vector.broadcast %47 : vector<16x1xf32> to vector<16x128xf32>
    %49 = arith.divf %31, %48 : vector<16x128xf32>
    %c0_19 = arith.constant 0 : index
    %c0_20 = arith.constant 0 : index
    %50 = vector.load %arg4[%c0_19, %c0_20] : memref<64x128xf32, #tpu.memory_space<vmem>>, vector<64x128xf32>
    %cst_21 = arith.constant dense<0.000000e+00> : vector<16x128xf32>
    %51 = tpu.matmul %45, %50, %cst_21 {dimension_numbers = #tpu.dot_dimension_numbers<[1], [0], [0], [1], [0, 0, 1, 1], [], []>} : vector<16x64xf32>, vector<64x128xf32>, vector<16x128xf32> -> vector<16x128xf32>
    %52 = arith.addf %49, %51 : vector<16x128xf32>
    %cst_22 = arith.constant dense<0.000000e+00> : vector<16xf32>
    %53 = vector.multi_reduction <add>, %52, %cst_22 [1] : vector<16x128xf32> to vector<16xf32>
    %54 = vector.shape_cast %53 : vector<16xf32> to vector<16x1xf32>
    %cst_23 = arith.constant 1.562500e-02 : f32
    %55 = vector.broadcast %cst_23 : f32 to vector<16x1xf32>
    %56 = arith.mulf %54, %55 : vector<16x1xf32>
    %57 = vector.broadcast %28 : vector<16x1xf32> to vector<16x128xf32>
    %58 = arith.mulf %52, %57 : vector<16x128xf32>
    %cst_24 = arith.constant 1.000000e-01 : f32
    %59 = vector.broadcast %cst_24 : f32 to vector<16x1xf32>
    %60 = arith.addf %56, %59 : vector<16x1xf32>
    %61 = vector.broadcast %60 : vector<16x1xf32> to vector<16x128xf32>
    %62 = arith.divf %58, %61 : vector<16x128xf32>
    %c0_25 = arith.constant 0 : index
    %c0_26 = arith.constant 0 : index
    %63 = vector.load %arg5[%c0_25, %c0_26] : memref<16x128xf32, #tpu.memory_space<vmem>>, vector<16x128xf32>
    tpu.vector_store %arg5[%c0_25, %c0_26], %62 {strides = array<i32>} : memref<16x128xf32, #tpu.memory_space<vmem>>, vector<16x128xf32>,
    return
  }
  func.func @transform_0(%arg0: i32) -> (i32, i32) {
    %c0_i32 = arith.constant 0 : i32
    %c0_i32_0 = arith.constant 0 : i32
    return %arg0, %c0_i32 : i32, i32
  }
  func.func @transform_1(%arg0: i32) -> (i32, i32) {
    %c0_i32 = arith.constant 0 : i32
    %c0_i32_0 = arith.constant 0 : i32
    %c0_i32_1 = arith.constant 0 : i32
    return %c0_i32, %c0_i32_0 : i32, i32
  }
  func.func @transform_2(%arg0: i32) -> (i32, i32) {
    %c0_i32 = arith.constant 0 : i32
    %c0_i32_0 = arith.constant 0 : i32
    %c0_i32_1 = arith.constant 0 : i32
    return %c0_i32, %c0_i32_0 : i32, i32
  }
  func.func @transform_3(%arg0: i32) -> (i32, i32) {
    %c0_i32 = arith.constant 0 : i32
    %c0_i32_0 = arith.constant 0 : i32
    %c0_i32_1 = arith.constant 0 : i32
    return %c0_i32, %c0_i32_0 : i32, i32
  }
  func.func @transform_4(%arg0: i32) -> (i32, i32) {
    %c0_i32 = arith.constant 0 : i32
    %c0_i32_0 = arith.constant 0 : i32
    return %arg0, %c0_i32 : i32, i32
  }
}

</mosaic_0001>

<bundles_post_ra>
// kernel: tpu_custom_call.1
= control target key start
LH: loop header
LB: loop body
LE: loop exit
PB: predicated region body
PF: predicated region fallthrough
CT: control target
= control target key end

     0   :  { %9 = vsyncpa [#allocation3], 0  ;;  %s1106_s0 = inlined_call_operand.vmem [shape: f32[16,8], index: 0, kind: input, shape index: {}]   ;;  %s1107_s1 = inlined_call_operand.hbm [shape: f32[80,256], index: 1, kind: input, shape index: {}]   ;;  %s1108_s2 = inlined_call_operand.hbm [shape: f32[256,512], index: 2, kind: input, shape index: {}]   ;;  %s1109_s3 = inlined_call_operand.hbm [shape: f32[64,128], index: 3, kind: input, shape index: {}]   ;;  %s1110_s4 = inlined_call_operand.hbm [shape: f32[16,128], index: 4, kind: output, shape index: {}]  }
   0x1   :  { %10 = vsyncpa [#allocation6], 0 }
   0x2   :  { %11 = vsyncpa [#allocation4], 0  ;;  %s1029_s15 = smov [#allocation5]  }
   0x3   :  { %s31_s16 = sshll.u32 %s1029_s15, 4  ;;  %s32_s16 = int_to_ptr.vmem [resolvable:$true] %s31_s16 }
   0x4   :  { %s951_s17 = scalar_lea.vmem %s32_s16, 16384  ;;  %p956_p1 = scmp.lt.s32.totalorder %s32_s16, %s32_s16 }
   0x5   :  { %p952_p0 = scmp.ne.s32.totalorder %s32_s16, %s951_s17  ;;  %p957_p2 = scmp.lt.s32.totalorder %s951_s17, %s951_s17 }
   0x7   :  { %p958_p3 = por %p957_p2, %p956_p1 }
   0x9   :  { %p959_p4 = pnand %p958_p3, %p952_p0 }
   0xb   :  { %962 = shalt.err (!%p959_p4)
}
   0xc   :  { %s1030_s18 = smov 512   ;;  %s1031_s19 = smov 32  }
   0xd   :  { %37 = dma.hbm_to_vmem [thread:$0]  %s1108_s2, 16384, %s32_s16, [#allocation6], %s1030_s18, %s1030_s18, %s1031_s19  }
   0xe   :  { %s1032_s22 = smov [#allocation2]  }
   0xf   :  { %s19_s23 = sshll.u32 %s1032_s22, 4  ;;  %s20_s23 = int_to_ptr.vmem [resolvable:$true] %s19_s23 }
  0x10   :  { %s971_s24 = scalar_lea.vmem %s20_s23, 2560  ;;  %p976_p6 = scmp.lt.s32.totalorder %s20_s23, %s20_s23 }
  0x11   :  { %p972_p5 = scmp.ne.s32.totalorder %s20_s23, %s971_s24  ;;  %p977_p7 = scmp.lt.s32.totalorder %s971_s24, %s971_s24 }
  0x13   :  { %p978_p8 = por %p977_p7, %p976_p6 }
  0x15   :  { %p979_p9 = pnand %p978_p8, %p972_p5 }
  0x17   :  { %982 = shalt.err (!%p979_p9)
}
  0x18   :  { %s1033_s25 = smov 256   ;;  %s1034_s26 = smov 16  }
  0x19   :  { %25 = dma.hbm_to_vmem [thread:$0]  %s1107_s1, 2560, %s20_s23, [#allocation3], %s1033_s25, %s1033_s25, %s1034_s26  }
  0x1a   :  { %s1035_s29 = smov [#allocation7]  }
  0x1b   :  { %s43_s30 = sshll.u32 %s1035_s29, 4  ;;  %s44_s30 = int_to_ptr.vmem [resolvable:$true] %s43_s30 }
  0x1c   :  { %s991_s2 = scalar_lea.vmem %s44_s30, 1024  ;;  %p996_p11 = scmp.lt.s32.totalorder %s44_s30, %s44_s30 }
  0x1d   :  { %p992_p10 = scmp.ne.s32.totalorder %s44_s30, %s991_s2  ;;  %p997_p12 = scmp.lt.s32.totalorder %s991_s2, %s991_s2 }
  0x1f   :  { %p998_p13 = por %p997_p12, %p996_p11 }
  0x21   :  { %p999_p0 = pnand %p998_p13, %p992_p10 }
  0x23   :  { %1002 = shalt.err (!%p999_p0)
}
  0x24   :  { %s1036_s5 = smov 128   ;;  %s1037_s6 = smov 8  }
  0x25   :  { %49 = dma.hbm_to_vmem [thread:$0]  %s1109_s3, 1024, %s44_s30, [#allocation6], %s1036_s5, %s1036_s5, %s1037_s6  }
  0x26   :  { %1023 = dma.done.wait [#allocation3], 2560  }
  0x27   :  { %1024 = vsyncadd [#allocation3], 4294964736 }
  0x28   :  { %1025 = dma.done.wait [#allocation6], 17408  }
  0x29   :  { %1026 = vsyncadd [#allocation6], 4294949888  ;;  %vm78_vm0 = vcmask 64512   ;;  %v59_v0 = vld [vmem:[#allocation2 + $0x50] sm:$0xff]  ;;  %v76_v1 = vld [vmem:[%s1106_s0] sm:$0xff]  ;;  %vm162_vm1 = vcmask 261120  }
  0x2a   :  { %v77_v2 = vld [vmem:[%s1106_s0 + $0x8] sm:$0xff]  ;;  %855 = vmatprep.subr.mxu1 %v59_v0  ;;  %857 = vmatprep.mubr.msk.f32.mxu1 %vm78_vm0, %v76_v1  ;;  %v63_v3 = vld [vmem:[#allocation2 + $0x90] sm:$0xff]  ;;  %v62_v4 = vld [vmem:[#allocation2 + $0x80] sm:$0xff]  ;;  %v1038_v18 = vmov 0.0   ;;  %s1040_s0 = smov 64   ;;  %vm700_vm2 = vcmask 523264  }
  0x2b   :  { %856 = vmatpush3.msra.mxu1 %v59_v0  ;;  %860 = vmatprep.subr.mxu0 %v63_v3  ;;  %v61_v5 = vld [vmem:[#allocation2 + $0x70] sm:$0xff]  ;;  %v60_v6 = vld [vmem:[#allocation2 + $0x60] sm:$0xff]  ;;  %v71_v14 = vld [vmem:[#allocation2 + $0x38] sm:$0xff]  ;;  %s1042_s3 = smov [#allocation8]  }
  0x2c   :  { %858 = vmatmul.mubr.msk.f32.vlgmr.msra.gmra.mxu1 %vm78_vm0, %v77_v2  ;;  %861 = vmatpush3.msra.mxu0 %v63_v3  ;;  %v72_v7 = vld [vmem:[#allocation2 + $0x41] ss:$0 sm:$0xff]  ;;  %v70_v15 = vld [vmem:[#allocation2 + $0x30] sm:$0xff]  ;;  %v69_v16 = vld [vmem:[#allocation2 + $0x28] sm:$0xff]  ;;  %s815_s12 = sshll.u32 %s1042_s3, 4  ;;  %s816_s12 = int_to_ptr.vmem [resolvable:$true] %s815_s12 }
  0x2d   :  { %862 = vmatprep.subr.mxu0 %v62_v4  ;;  %v68_v17 = vld [vmem:[#allocation2 + $0x20] sm:$0xff]  ;;  %v67_v19 = vld [vmem:[#allocation2 + $0x18] sm:$0xff]  ;;  %v66_v20 = vld [vmem:[#allocation2 + $0x10] sm:$0xff]  ;;  %s1003_s13 = scalar_lea.vmem %s816_s12, 256  ;;  %p1008_p2 = scmp.lt.s32.totalorder %s816_s12, %s816_s12 }
  0x2e   :  { %863 = vmatpush3.msra.mxu0 %v62_v4  ;;  %v65_v21 = vld [vmem:[#allocation2 + $0x8] sm:$0xff]  ;;  %v64_v22 = vld [vmem:[#allocation2] sm:$0xff]  ;;  %v439_v24 = vld [vmem:[#allocation5 + $0x1f8] sm:$0xff]  ;;  %p1004_p1 = scmp.ne.s32.totalorder %s816_s12, %s1003_s13  ;;  %p1009_p3 = scmp.lt.s32.totalorder %s1003_s13, %s1003_s13 }
  0x2f   :  { %864 = vmatprep.subr.mxu0 %v61_v5  ;;  %v437_v23 = vld [vmem:[#allocation5 + $0x1e8] sm:$0xff]  ;;  %v436_v25 = vld [vmem:[#allocation5 + $0x1e0] sm:$0xff]  ;;  %v438_v47 = vld [vmem:[#allocation5 + $0x1f0] sm:$0xff] }
  0x30   :  { %865 = vmatpush3.msra.mxu0 %v61_v5  ;;  %504 = vmatprep.subr.mxu1 %v437_v23  ;;  %v433_v26 = vld [vmem:[#allocation5 + $0x1c8] sm:$0xff]  ;;  %v432_v27 = vld [vmem:[#allocation5 + $0x1c0] sm:$0xff]  ;;  %v435_v49 = vld [vmem:[#allocation5 + $0x1d8] sm:$0xff]  ;;  %p1010_p4 = por %p1009_p3, %p1008_p2 }
  0x31   :  { %866 = vmatprep.subr.mxu0 %v60_v6  ;;  %505 = vmatpush1.msra.mxu1 %v436_v25  ;;  %v429_v28 = vld [vmem:[#allocation5 + $0x1a8] sm:$0xff]  ;;  %v428_v29 = vld [vmem:[#allocation5 + $0x1a0] sm:$0xff]  ;;  %v434_v50 = vld [vmem:[#allocation5 + $0x1d0] sm:$0xff] }
  0x32   :  { %867 = vmatpush3.msra.mxu0 %v60_v6  ;;  %506 = vmatprep.subr.mxu1 %v433_v26  ;;  %v425_v30 = vld [vmem:[#allocation5 + $0x188] sm:$0xff]  ;;  %v424_v31 = vld [vmem:[#allocation5 + $0x180] sm:$0xff]  ;;  %v431_v51 = vld [vmem:[#allocation5 + $0x1b8] sm:$0xff]  ;;  %p1011_p5 = pnand %p1010_p4, %p1004_p1 }
  0x33   :  { %287 = vmatprep.subr.mxu0 %v71_v14  ;;  %507 = vmatpush1.msra.mxu1 %v432_v27  ;;  %v421_v32 = vld [vmem:[#allocation5 + $0x168] sm:$0xff]  ;;  %v420_v33 = vld [vmem:[#allocation5 + $0x160] sm:$0xff]  ;;  %v430_v52 = vld [vmem:[#allocation5 + $0x1b0] sm:$0xff] }
  0x34   :  { %508 = vmatprep.subr.mxu1 %v429_v28  ;;  %v417_v34 = vld [vmem:[#allocation5 + $0x148] sm:$0xff]  ;;  %v416_v35 = vld [vmem:[#allocation5 + $0x140] sm:$0xff]  ;;  %v427_v54 = vld [vmem:[#allocation5 + $0x198] sm:$0xff] }
  0x35   :  { %509 = vmatpush1.msra.mxu1 %v428_v29  ;;  %v413_v36 = vld [vmem:[#allocation5 + $0x128] sm:$0xff]  ;;  %v412_v37 = vld [vmem:[#allocation5 + $0x120] sm:$0xff]  ;;  %v426_v55 = vld [vmem:[#allocation5 + $0x190] sm:$0xff] }
  0x36   :  { %510 = vmatprep.subr.mxu1 %v425_v30  ;;  %v409_v38 = vld [vmem:[#allocation5 + $0x108] sm:$0xff]  ;;  %v408_v39 = vld [vmem:[#allocation5 + $0x100] sm:$0xff]  ;;  %v423_v56 = vld [vmem:[#allocation5 + $0x178] sm:$0xff] }
  0x37   :  { %511 = vmatpush1.msra.mxu1 %v424_v31  ;;  %v405_v40 = vld [vmem:[#allocation5 + $0xe8] sm:$0xff]  ;;  %v404_v41 = vld [vmem:[#allocation5 + $0xe0] sm:$0xff]  ;;  %v422_v57 = vld [vmem:[#allocation5 + $0x170] sm:$0xff] }
  0x38   :  { %512 = vmatprep.subr.mxu1 %v421_v32  ;;  %v73_v43 = vld [vmem:[#allocation2 + $0x42] ss:$0 sm:$0xff]  ;;  %v419_v58 = vld [vmem:[#allocation5 + $0x158] sm:$0xff]  ;;  %v418_v59 = vld [vmem:[#allocation5 + $0x150] sm:$0xff] }
  0x39   :  { %513 = vmatpush1.msra.mxu1 %v420_v33  ;;  %v415_v60 = vld [vmem:[#allocation5 + $0x138] sm:$0xff]  ;;  %v414_v61 = vld [vmem:[#allocation5 + $0x130] sm:$0xff]  ;;  %v401_v2 = vld [vmem:[#allocation5 + $0xc8] sm:$0xff] }
  0x3a   :  { %514 = vmatprep.subr.mxu1 %v417_v34  ;;  %v411_v62 = vld [vmem:[#allocation5 + $0x118] sm:$0xff]  ;;  %v410_v63 = vld [vmem:[#allocation5 + $0x110] sm:$0xff]  ;;  %v400_v4 = vld [vmem:[#allocation5 + $0xc0] sm:$0xff] }
  0x3b   :  { %515 = vmatpush1.msra.mxu1 %v416_v35  ;;  %v407_v0 = vld [vmem:[#allocation5 + $0xf8] sm:$0xff]  ;;  %v406_v1 = vld [vmem:[#allocation5 + $0xf0] sm:$0xff]  ;;  %v397_v6 = vld [vmem:[#allocation5 + $0xa8] sm:$0xff] }
  0x3c   :  { %516 = vmatprep.subr.mxu1 %v413_v36  ;;  %v403_v3 = vld [vmem:[#allocation5 + $0xd8] sm:$0xff]  ;;  %v402_v5 = vld [vmem:[#allocation5 + $0xd0] sm:$0xff]  ;;  %v389_v14 = vld [vmem:[#allocation5 + $0x68] sm:$0xff] }
  0x3d   :  { %517 = vmatpush1.msra.mxu1 %v412_v37  ;;  %v383_v23 = vld [vmem:[#allocation5 + $0x38] sm:$0xff]  ;;  %v382_v25 = vld [vmem:[#allocation5 + $0x30] sm:$0xff]  ;;  %v377_v26 = vld [vmem:[#allocation5 + $0x8] sm:$0xff] }
  0x3e   :  { %518 = vmatprep.subr.mxu1 %v409_v38  ;;  %v379_v27 = vld [vmem:[#allocation5 + $0x18] sm:$0xff]  ;;  %v376_v28 = vld [vmem:[#allocation5] sm:$0xff]  ;;  %v378_v29 = vld [vmem:[#allocation5 + $0x10] sm:$0xff] }
  0x3f   :  { %519 = vmatpush1.msra.mxu1 %v408_v39  ;;  %v501_v30 = vld [vmem:[#allocation5 + $0x3e8] sm:$0xff]  ;;  %v503_v31 = vld [vmem:[#allocation5 + $0x3f8] sm:$0xff]  ;;  %v500_v32 = vld [vmem:[#allocation5 + $0x3e0] sm:$0xff] }
  0x40   :  { %520 = vmatprep.subr.mxu1 %v405_v40  ;;  %v502_v33 = vld [vmem:[#allocation5 + $0x3f0] sm:$0xff]  ;;  %v497_v34 = vld [vmem:[#allocation5 + $0x3c8] sm:$0xff]  ;;  %v499_v35 = vld [vmem:[#allocation5 + $0x3d8] sm:$0xff] }
  0x41   :  { %521 = vmatpush1.msra.mxu1 %v404_v41  ;;  %v496_v36 = vld [vmem:[#allocation5 + $0x3c0] sm:$0xff]  ;;  %v498_v37 = vld [vmem:[#allocation5 + $0x3d0] sm:$0xff]  ;;  %v493_v38 = vld [vmem:[#allocation5 + $0x3a8] sm:$0xff] }
  0x42   :  { %522 = vmatprep.subr.mxu1 %v401_v2  ;;  %v495_v39 = vld [vmem:[#allocation5 + $0x3b8] sm:$0xff]  ;;  %v492_v40 = vld [vmem:[#allocation5 + $0x3a0] sm:$0xff]  ;;  %v494_v41 = vld [vmem:[#allocation5 + $0x3b0] sm:$0xff] }
  0x43   :  { %523 = vmatpush1.msra.mxu1 %v400_v4  ;;  %v465_v2 = vld [vmem:[#allocation5 + $0x2c8] sm:$0xff]  ;;  %v464_v4 = vld [vmem:[#allocation5 + $0x2c0] sm:$0xff] }
  0x44   :  { %524 = vmatprep.subr.mxu1 %v397_v6  ;;  %v461_v6 = vld [vmem:[#allocation5 + $0x2a8] sm:$0xff] }
  0xec   :  { %v859_v8 = vpop.f32.mrf.mxu1 }
  0xed   :  { %v157_v9 = vadd.f32 %v859_v8, %v72_v7  ;;  %v396_v8 = vld [vmem:[#allocation5 + $0xa0] sm:$0xff] }
  0xee   :  { %v151_v10 = vpop.f32.mrf.mxu1  ;;  %525 = vmatpush1.msra.mxu1 %v396_v8  ;;  %v460_v8 = vld [vmem:[#allocation5 + $0x2a0] sm:$0xff] }
  0xef   :  { %v152_v11 = vadd.f32 %v151_v10, %v72_v7  ;;  %v399_v7 = vld [vmem:[#allocation5 + $0xb8] sm:$0xff]  ;;  %v393_v10 = vld [vmem:[#allocation5 + $0x88] sm:$0xff] }
  0xf0   :  { %526 = vmatprep.subr.mxu1 %v393_v10  ;;  %v457_v10 = vld [vmem:[#allocation5 + $0x288] sm:$0xff] }
  0xf1   :  { %907 = vtanh.f32 %v152_v11  ;;  %v395_v11 = vld [vmem:[#allocation5 + $0x98] sm:$0xff] }
  0xf2   :  { %909 = vtanh.f32 %v157_v9  ;;  %v398_v9 = vld [vmem:[#allocation5 + $0xb0] sm:$0xff] }
  0xfe   :  { %v908_v12 = vpop.eup %907 }
  0xff   :  { %v910_v13 = vpop.eup %909  ;;  %868 = vmatprep.mubr.msk.f32.mxu0 %vm162_vm1, %v908_v12  ;;  %v392_v12 = vld [vmem:[#allocation5 + $0x80] sm:$0xff] }
 0x100   :  { %869 = vmatmul.mubr.msk.f32.vlgmr.msra.gmra.mxu0 %vm162_vm1, %v910_v13  ;;  %v394_v13 = vld [vmem:[#allocation5 + $0x90] sm:$0xff]  ;;  %527 = vmatpush1.msra.mxu1 %v392_v12  ;;  %v456_v12 = vld [vmem:[#allocation5 + $0x280] sm:$0xff] }
 0x101   :  { %327 = vmatprep.mubr.f32.mxu0 %v1038_v18  ;;  %288 = vmatpush1.msra.mxu0 %v70_v15  ;;  %v391_v15 = vld [vmem:[#allocation5 + $0x78] sm:$0xff] }
 0x102   :  { %289 = vmatprep.subr.mxu0 %v69_v16  ;;  %528 = vmatprep.subr.mxu1 %v389_v14  ;;  %v388_v16 = vld [vmem:[#allocation5 + $0x60] sm:$0xff]  ;;  %v453_v14 = vld [vmem:[#allocation5 + $0x268] sm:$0xff] }
 0x103   :  { %290 = vmatpush1.msra.mxu0 %v68_v17  ;;  %v390_v17 = vld [vmem:[#allocation5 + $0x70] sm:$0xff]  ;;  %529 = vmatpush1.msra.mxu1 %v388_v16  ;;  %v452_v16 = vld [vmem:[#allocation5 + $0x260] sm:$0xff] }
 0x104   :  { %291 = vmatprep.subr.mxu0 %v67_v19  ;;  %v387_v19 = vld [vmem:[#allocation5 + $0x58] sm:$0xff] }
 0x105   :  { %292 = vmatpush1.msra.mxu0 %v66_v20  ;;  %v384_v20 = vld [vmem:[#allocation5 + $0x40] sm:$0xff] }
 0x106   :  { %293 = vmatprep.subr.mxu0 %v65_v21  ;;  %v386_v21 = vld [vmem:[#allocation5 + $0x50] sm:$0xff] }
 0x107   :  { %294 = vmatpush1.msra.mxu0 %v64_v22  ;;  %v381_v22 = vld [vmem:[#allocation5 + $0x28] sm:$0xff] }
 0x108   :  { %581 = vmatprep.subr.mxu0 %v439_v24  ;;  %v380_v24 = vld [vmem:[#allocation5 + $0x20] sm:$0xff] }
 0x1c0   :  { %v870_v42 = vpop.f32.mrf.mxu0 }
 0x1c1   :  { %v241_v46 = vadd.f32 %v870_v42, %v73_v43  ;;  %v489_v42 = vld [vmem:[#allocation5 + $0x388] sm:$0xff] }
 0x1c2   :  { %v235_v44 = vpop.f32.mrf.mxu0 }
 0x1c3   :  { %v236_v45 = vadd.f32 %v235_v44, %v73_v43  ;;  %v491_v43 = vld [vmem:[#allocation5 + $0x398] sm:$0xff]  ;;  %v488_v44 = vld [vmem:[#allocation5 + $0x380] sm:$0xff] }
 0x1c5   :  { %911 = vtanh.f32 %v236_v45  ;;  %v490_v45 = vld [vmem:[#allocation5 + $0x390] sm:$0xff] }
 0x1c6   :  { %913 = vtanh.f32 %v241_v46  ;;  %v485_v46 = vld [vmem:[#allocation5 + $0x368] sm:$0xff] }
 0x1d2   :  { %v912_v48 = vpop.eup %911 }
 0x1d3   :  { %832 = vmatmul.mubr.msk.f32.vlgmr.msra.gmra.mxu0 %vm162_vm1, %v912_v48  ;;  %v914_v53 = vpop.eup %913  ;;  %v484_v48 = vld [vmem:[#allocation5 + $0x360] sm:$0xff] }
 0x1d4   :  { %333 = vmatprep.mubr.f32.mxu0 %v1038_v18  ;;  %582 = vmatpush1.msra.mxu0 %v438_v47  ;;  %v385_v18 = vld [vmem:[#allocation5 + $0x48] sm:$0xff]  ;;  %v487_v47 = vld [vmem:[#allocation5 + $0x378] sm:$0xff] }
 0x1d5   :  { %583 = vmatprep.subr.mxu0 %v435_v49  ;;  %530 = vmatprep.subr.mxu1 %v385_v18  ;;  %v486_v49 = vld [vmem:[#allocation5 + $0x370] sm:$0xff]  ;;  %v449_v18 = vld [vmem:[#allocation5 + $0x248] sm:$0xff] }
 0x1d6   :  { %584 = vmatpush1.msra.mxu0 %v434_v50  ;;  %531 = vmatpush1.msra.mxu1 %v384_v20  ;;  %v481_v50 = vld [vmem:[#allocation5 + $0x348] sm:$0xff]  ;;  %v448_v20 = vld [vmem:[#allocation5 + $0x240] sm:$0xff] }
 0x1d7   :  { %833 = vmatmul.mubr.msk.f32.gmra.mxu0 %vm162_vm1, %v914_v53  ;;  %585 = vmatprep.subr.mxu0 %v431_v51  ;;  %v483_v51 = vld [vmem:[#allocation5 + $0x358] sm:$0xff]  ;;  %v482_v53 = vld [vmem:[#allocation5 + $0x350] sm:$0xff] }
 0x1d8   :  { %586 = vmatpush1.msra.mxu0 %v430_v52  ;;  %532 = vmatprep.subr.mxu1 %v381_v22  ;;  %v480_v52 = vld [vmem:[#allocation5 + $0x340] sm:$0xff]  ;;  %v445_v22 = vld [vmem:[#allocation5 + $0x228] sm:$0xff] }
 0x1d9   :  { %587 = vmatprep.subr.mxu0 %v427_v54  ;;  %533 = vmatpush1.msra.mxu1 %v380_v24  ;;  %v477_v54 = vld [vmem:[#allocation5 + $0x328] sm:$0xff]  ;;  %v444_v24 = vld [vmem:[#allocation5 + $0x220] sm:$0xff] }
 0x1da   :  { %588 = vmatpush1.msra.mxu0 %v426_v55  ;;  %534 = vmatprep.subr.mxu1 %v377_v26  ;;  %v479_v55 = vld [vmem:[#allocation5 + $0x338] sm:$0xff]  ;;  %v441_v26 = vld [vmem:[#allocation5 + $0x208] sm:$0xff] }
 0x1db   :  { %589 = vmatprep.subr.mxu0 %v423_v56  ;;  %535 = vmatpush1.msra.mxu1 %v376_v28  ;;  %v476_v56 = vld [vmem:[#allocation5 + $0x320] sm:$0xff] }
 0x1dc   :  { %590 = vmatpush1.msra.mxu0 %v422_v57  ;;  %536 = vmatprep.subr.mxu1 %v501_v30  ;;  %v478_v57 = vld [vmem:[#allocation5 + $0x330] sm:$0xff]  ;;  %v440_v28 = vld [vmem:[#allocation5 + $0x200] sm:$0xff]  ;;  %v247_v30 = vlaneseq }
 0x1dd   :  { %591 = vmatprep.subr.mxu0 %v419_v58  ;;  %537 = vmatpush2.msra.mxu1 %v500_v32  ;;  %v473_v58 = vld [vmem:[#allocation5 + $0x308] sm:$0xff] }
 0x1de   :  { %592 = vmatpush1.msra.mxu0 %v418_v59  ;;  %538 = vmatprep.subr.mxu1 %v497_v34  ;;  %v475_v59 = vld [vmem:[#allocation5 + $0x318] sm:$0xff] }
 0x1df   :  { %593 = vmatprep.subr.mxu0 %v415_v60  ;;  %539 = vmatpush2.msra.mxu1 %v496_v36  ;;  %v472_v60 = vld [vmem:[#allocation5 + $0x300] sm:$0xff] }
 0x1e0   :  { %594 = vmatpush1.msra.mxu0 %v414_v61  ;;  %540 = vmatprep.subr.mxu1 %v493_v38  ;;  %v474_v61 = vld [vmem:[#allocation5 + $0x310] sm:$0xff] }
 0x1e1   :  { %595 = vmatprep.subr.mxu0 %v411_v62  ;;  %541 = vmatpush2.msra.mxu1 %v492_v40  ;;  %v469_v62 = vld [vmem:[#allocation5 + $0x2e8] sm:$0xff] }
 0x1e2   :  { %596 = vmatpush1.msra.mxu0 %v410_v63  ;;  %542 = vmatprep.subr.mxu1 %v489_v42  ;;  %v471_v63 = vld [vmem:[#allocation5 + $0x2f8] sm:$0xff] }
 0x1e3   :  { %597 = vmatprep.subr.mxu0 %v407_v0  ;;  %543 = vmatpush2.msra.mxu1 %v488_v44  ;;  %v468_v0 = vld [vmem:[#allocation5 + $0x2e0] sm:$0xff] }
 0x1e4   :  { %598 = vmatpush1.msra.mxu0 %v406_v1  ;;  %544 = vmatprep.subr.mxu1 %v485_v46  ;;  %v470_v1 = vld [vmem:[#allocation5 + $0x2f0] sm:$0xff] }
 0x1e5   :  { %599 = vmatprep.subr.mxu0 %v403_v3  ;;  %545 = vmatpush2.msra.mxu1 %v484_v48  ;;  %v467_v3 = vld [vmem:[#allocation5 + $0x2d8] sm:$0xff] }
 0x1e6   :  { %600 = vmatpush1.msra.mxu0 %v402_v5  ;;  %546 = vmatprep.subr.mxu1 %v481_v50  ;;  %v466_v5 = vld [vmem:[#allocation5 + $0x2d0] sm:$0xff] }
 0x1e7   :  { %601 = vmatprep.subr.mxu0 %v399_v7  ;;  %547 = vmatpush2.msra.mxu1 %v480_v52  ;;  %v463_v7 = vld [vmem:[#allocation5 + $0x2b8] sm:$0xff] }
 0x1e8   :  { %602 = vmatpush1.msra.mxu0 %v398_v9  ;;  %548 = vmatprep.subr.mxu1 %v477_v54  ;;  %v462_v9 = vld [vmem:[#allocation5 + $0x2b0] sm:$0xff] }
 0x1e9   :  { %603 = vmatprep.subr.mxu0 %v395_v11  ;;  %549 = vmatpush2.msra.mxu1 %v476_v56  ;;  %v459_v11 = vld [vmem:[#allocation5 + $0x298] sm:$0xff] }
 0x1ea   :  { %604 = vmatpush1.msra.mxu0 %v394_v13  ;;  %550 = vmatprep.subr.mxu1 %v473_v58  ;;  %v458_v13 = vld [vmem:[#allocation5 + $0x290] sm:$0xff] }
 0x1eb   :  { %605 = vmatprep.subr.mxu0 %v391_v15  ;;  %551 = vmatpush2.msra.mxu1 %v472_v60  ;;  %v455_v15 = vld [vmem:[#allocation5 + $0x278] sm:$0xff] }
 0x1ec   :  { %606 = vmatpush1.msra.mxu0 %v390_v17  ;;  %552 = vmatprep.subr.mxu1 %v469_v62  ;;  %v454_v17 = vld [vmem:[#allocation5 + $0x270] sm:$0xff] }
 0x1ed   :  { %607 = vmatprep.subr.mxu0 %v387_v19  ;;  %553 = vmatpush2.msra.mxu1 %v468_v0  ;;  %v451_v19 = vld [vmem:[#allocation5 + $0x258] sm:$0xff] }
 0x1ee   :  { %608 = vmatpush1.msra.mxu0 %v386_v21  ;;  %554 = vmatprep.subr.mxu1 %v465_v2  ;;  %v450_v21 = vld [vmem:[#allocation5 + $0x250] sm:$0xff] }
 0x1ef   :  { %609 = vmatprep.subr.mxu0 %v383_v23  ;;  %555 = vmatpush2.msra.mxu1 %v464_v4  ;;  %v447_v23 = vld [vmem:[#allocation5 + $0x238] sm:$0xff] }
 0x1f0   :  { %610 = vmatpush1.msra.mxu0 %v382_v25  ;;  %556 = vmatprep.subr.mxu1 %v461_v6  ;;  %v446_v25 = vld [vmem:[#allocation5 + $0x230] sm:$0xff] }
 0x1f1   :  { %611 = vmatprep.subr.mxu0 %v379_v27  ;;  %557 = vmatpush2.msra.mxu1 %v460_v8  ;;  %v443_v27 = vld [vmem:[#allocation5 + $0x218] sm:$0xff] }
 0x1f2   :  { %612 = vmatpush1.msra.mxu0 %v378_v29  ;;  %558 = vmatprep.subr.mxu1 %v457_v10  ;;  %v442_v29 = vld [vmem:[#allocation5 + $0x210] sm:$0xff] }
 0x1f3   :  { %613 = vmatprep.subr.mxu0 %v503_v31  ;;  %559 = vmatpush2.msra.mxu1 %v456_v12  ;;  %v248_v31 = vshrl.u32 %v247_v30, 7  ;;  %v693_v30 = vld [vmem:[#allocation7 + $0x8] sm:$0xff] }
 0x1f4   :  { %614 = vmatpush2.msra.mxu0 %v502_v33  ;;  %560 = vmatprep.subr.mxu1 %v453_v14  ;;  %v75_v33 = vld [vmem:[#allocation2 + $0x40] ss:$8 sm:$0x3] }
 0x1f5   :  { %615 = vmatprep.subr.mxu0 %v499_v35  ;;  %561 = vmatpush2.msra.mxu1 %v452_v16  ;;  %v249_v32 = vsub.s32 0, %v248_v31  ;;  %v253_v34 = vsub.s32 1, %v248_v31  ;;  %v692_v31 = vld [vmem:[#allocation7] sm:$0xff] }
 0x1f6   :  { %616 = vmatpush2.msra.mxu0 %v498_v37  ;;  %562 = vmatprep.subr.mxu1 %v449_v18  ;;  %v699_v18 = vld [vmem:[#allocation7 + $0x38] sm:$0xff] }
 0x1f7   :  { %617 = vmatprep.subr.mxu0 %v495_v39  ;;  %563 = vmatpush2.msra.mxu1 %v448_v20  ;;  %v250_v35 = vrot.slane %v75_v33, %v249_v32  ;;  %v254_v36 = vrot.slane %v75_v33, %v253_v34  ;;  %v698_v20 = vld [vmem:[#allocation7 + $0x30] sm:$0xff] }
 0x1f8   :  { %618 = vmatpush2.msra.mxu0 %v494_v41  ;;  %564 = vmatprep.subr.mxu1 %v445_v22 }
 0x1f9   :  { %619 = vmatprep.subr.mxu0 %v491_v43  ;;  %565 = vmatpush2.msra.mxu1 %v444_v24 }
 0x1fa   :  { %620 = vmatpush2.msra.mxu0 %v490_v45  ;;  %566 = vmatprep.subr.mxu1 %v441_v26  ;;  %v695_v26 = vld [vmem:[#allocation7 + $0x18] sm:$0xff] }
 0x1fb   :  { %621 = vmatprep.subr.mxu0 %v487_v47  ;;  %567 = vmatpush2.msra.mxu1 %v440_v28 }
 0x1fc   :  { %622 = vmatpush2.msra.mxu0 %v486_v49  ;;  %871 = vmatprep.subr.mxu1 %v699_v18 }
 0x1fd   :  { %623 = vmatprep.subr.mxu0 %v483_v51 }
 0x1fe   :  { %624 = vmatpush2.msra.mxu0 %v482_v53 }
 0x1ff   :  { %625 = vmatprep.subr.mxu0 %v479_v55 }
 0x200   :  { %626 = vmatpush2.msra.mxu0 %v478_v57 }
 0x201   :  { %627 = vmatprep.subr.mxu0 %v475_v59 }
 0x202   :  { %628 = vmatpush2.msra.mxu0 %v474_v61 }
 0x203   :  { %629 = vmatprep.subr.mxu0 %v471_v63 }
 0x204   :  { %630 = vmatpush2.msra.mxu0 %v470_v1 }
 0x205   :  { %631 = vmatprep.subr.mxu0 %v467_v3 }
 0x206   :  { %632 = vmatpush2.msra.mxu0 %v466_v5 }
 0x207   :  { %633 = vmatprep.subr.mxu0 %v463_v7 }
 0x208   :  { %634 = vmatpush2.msra.mxu0 %v462_v9 }
 0x209   :  { %635 = vmatprep.subr.mxu0 %v459_v11 }
 0x20a   :  { %636 = vmatpush2.msra.mxu0 %v458_v13 }
 0x20b   :  { %637 = vmatprep.subr.mxu0 %v455_v15 }
 0x20c   :  { %638 = vmatpush2.msra.mxu0 %v454_v17  ;;  %v1039_v17 = vmov 63  }
 0x20d   :  { %639 = vmatprep.subr.mxu0 %v451_v19  ;;  %904 = vset.pattern.permute.xlu1 %v1039_v17 }
 0x20e   :  { %640 = vmatpush2.msra.mxu0 %v450_v21 }
 0x20f   :  { %641 = vmatprep.subr.mxu0 %v447_v23  ;;  %v697_v23 = vld [vmem:[#allocation7 + $0x28] sm:$0xff] }
 0x210   :  { %642 = vmatpush2.msra.mxu0 %v446_v25  ;;  %v696_v25 = vld [vmem:[#allocation7 + $0x20] sm:$0xff] }
 0x211   :  { %643 = vmatprep.subr.mxu0 %v443_v27 }
 0x212   :  { %644 = vmatpush2.msra.mxu0 %v442_v29  ;;  %v694_v29 = vld [vmem:[#allocation7 + $0x10] sm:$0xff] }
 0x293   :  { %v329_v37 = vpop.f32.mrf.mxu0 }
 0x294   :  { %v330_v38 = vadd.f32 %v329_v37, %v250_v35 }
 0x295   :  { %v331_v39 = vpop.f32.mrf.mxu0 }
 0x296   :  { %v344_v40 = vand.u32 2147483647, %v330_v38  ;;  %v332_v41 = vadd.f32 %v331_v39, %v254_v36  ;;  %v340_v7 = vmax.f32 %v330_v38, 0.0 }
 0x297   :  { %v335_v42 = vpop.f32.mrf.mxu0 }
 0x298   :  { %v348_v43 = vsub.f32 0.0, %v344_v40  ;;  %v345_v44 = vand.u32 2147483647, %v332_v41  ;;  %v336_v45 = vadd.f32 %v335_v42, %v250_v35  ;;  %v341_v4 = vmax.f32 %v332_v41, 0.0 }
 0x299   :  { %v337_v46 = vpop.f32.mrf.mxu0 }
 0x29a   :  { %v352_v47 = vmul.f32 1.442695, %v348_v43  ;;  %v349_v48 = vsub.f32 0.0, %v345_v44  ;;  %v346_v49 = vand.u32 2147483647, %v336_v45  ;;  %v338_v50 = vadd.f32 %v337_v46, %v254_v36 }
 0x29b   :  { %v342_v14 = vmax.f32 %v336_v45, 0.0 }
 0x29c   :  { %915 = vpow2.f32 %v352_v47  ;;  %v354_v51 = vmul.f32 1.442695, %v349_v48  ;;  %v350_v52 = vsub.f32 0.0, %v346_v49  ;;  %v347_v53 = vand.u32 2147483647, %v338_v50 }
 0x29d   :  { %v343_v12 = vmax.f32 %v338_v50, 0.0  ;;  %v1041_v48 = vmov 66  }
 0x29e   :  { %917 = vpow2.f32 %v354_v51  ;;  %v356_v54 = vmul.f32 1.442695, %v350_v52  ;;  %v351_v55 = vsub.f32 0.0, %v347_v53  ;;  %905 = vset.pattern.permute.xlu0 %v1041_v48 }
 0x2a0   :  { %919 = vpow2.f32 %v356_v54  ;;  %v358_v56 = vmul.f32 1.442695, %v351_v55 }
 0x2a2   :  { %921 = vpow2.f32 %v358_v56 }
 0x2a9   :  { %v916_v57 = vpop.eup %915 }
 0x2aa   :  { %v360_v58 = vadd.f32 1.0, %v916_v57 }
 0x2ab   :  { %v918_v59 = vpop.eup %917 }
 0x2ac   :  { %923 = vlog2.f32 %v360_v58  ;;  %v361_v60 = vadd.f32 1.0, %v918_v59 }
 0x2ad   :  { %v920_v61 = vpop.eup %919 }
 0x2ae   :  { %925 = vlog2.f32 %v361_v60  ;;  %v362_v62 = vadd.f32 1.0, %v920_v61 }
 0x2af   :  { %v922_v63 = vpop.eup %921 }
 0x2b0   :  { %927 = vlog2.f32 %v362_v62  ;;  %v363_v0 = vadd.f32 1.0, %v922_v63 }
 0x2b2   :  { %929 = vlog2.f32 %v363_v0 }
 0x2b9   :  { %v924_v1 = vpop.eup %923 }
 0x2ba   :  { %v365_v3 = vmul.f32 0.6931472, %v924_v1 }
 0x2bb   :  { %v926_v2 = vpop.eup %925 }
 0x2bc   :  { %v367_v5 = vmul.f32 0.6931472, %v926_v2  ;;  %v1090_v9 = vadd.f32 %v365_v3, %v340_v7 }
 0x2bd   :  { %v928_v6 = vpop.eup %927 }
 0x2be   :  { %v373_v8 = vadd.f32 %v367_v5, %v341_v4  ;;  %v369_v11 = vmul.f32 0.6931472, %v928_v6 }
 0x2bf   :  { %v930_v10 = vpop.eup %929 }
 0x2c0   :  { %568 = vmatprep.mubr.f32.mxu1 %v373_v8  ;;  %645 = vmatprep.mubr.f32.mxu0 %v373_v8  ;;  %v371_v13 = vmul.f32 0.6931472, %v930_v10  ;;  %v1094_v16 = vadd.f32 %v369_v11, %v342_v14 }
 0x2c1   :  { %569 = vmatmul.mubr.f32.vlgmr.msra.gmra.mxu1 %v1090_v9  ;;  %646 = vmatmul.mubr.f32.vlgmr.msra.gmra.mxu0 %v1090_v9 }
 0x2c2   :  { %v375_v15 = vadd.f32 %v371_v13, %v343_v12  ;;  %872 = vmatpush3.msra.mxu1 %v699_v18 }
 0x2c3   :  { %873 = vmatprep.subr.mxu1 %v698_v20 }
 0x2c4   :  { %574 = vmatprep.mubr.f32.mxu1 %v375_v15  ;;  %651 = vmatprep.mubr.f32.mxu0 %v375_v15 }
 0x2c5   :  { %575 = vmatmul.mubr.f32.gmra.mxu1 %v1094_v16  ;;  %652 = vmatmul.mubr.f32.gmra.mxu0 %v1094_v16 }
 0x2c6   :  { %874 = vmatpush3.msra.mxu1 %v698_v20 }
 0x2c7   :  { %875 = vmatprep.subr.mxu1 %v697_v23 }
 0x2c8   :  { %876 = vmatpush3.msra.mxu1 %v697_v23 }
 0x2c9   :  { %877 = vmatprep.subr.mxu1 %v696_v25 }
 0x2ca   :  { %878 = vmatpush3.msra.mxu1 %v696_v25 }
 0x2cb   :  { %879 = vmatprep.subr.mxu1 %v695_v26 }
 0x2cc   :  { %880 = vmatpush3.msra.mxu1 %v695_v26 }
 0x2cd   :  { %881 = vmatprep.subr.mxu1 %v694_v29 }
 0x2ce   :  { %882 = vmatpush3.msra.mxu1 %v694_v29 }
 0x2cf   :  { %883 = vmatprep.subr.mxu1 %v693_v30 }
 0x2d0   :  { %884 = vmatpush3.msra.mxu1 %v693_v30 }
 0x2d1   :  { %885 = vmatprep.subr.mxu1 %v692_v31 }
 0x2d2   :  { %886 = vmatpush3.msra.mxu1 %v692_v31 }
 0x381   :  { %v647_v19 = vpop.f32.mrf.mxu0  ;;  %v570_v38 = vpop.f32.mrf.mxu1 }
 0x383   :  { %v649_v21 = vpop.f32.mrf.mxu0  ;;  %v572_v39 = vpop.f32.mrf.mxu1 }
 0x384   :  { %v658_v22 = vmax.f32 %v649_v21, 1e-12 }
 0x385   :  { %v653_v24 = vpop.f32.mrf.mxu0  ;;  %v576_v40 = vpop.f32.mrf.mxu1 }
 0x386   :  { %931 = vrcp.f32 %v658_v22  ;;  %680 = vperm.xlu1 %904, %v658_v22  }
 0x387   :  { %v655_v27 = vpop.f32.mrf.mxu0  ;;  %v578_v44 = vpop.f32.mrf.mxu1 }
 0x388   :  { %v659_v28 = vmax.f32 %v655_v27, 1e-12 }
 0x38a   :  { %933 = vrcp.f32 %v659_v28  ;;  %685 = vperm.xlu1 %904, %v659_v28  }
 0x38e   :  { %906 = vset.pattern.permute.xlu1 %v1041_v48 }
 0x393   :  { %v932_v32 = vpop.eup %931 }
 0x394   :  { %v661_v33 = vmul.f32 %v932_v32, %v647_v19 }
 0x396   :  { %v666_v34 = vsub.f32 1.0, %v661_v33  ;;  %v664_v41 = vmul.f32 %v661_v33, %v572_v39 }
 0x397   :  { %v934_v35 = vpop.eup %933 }
 0x398   :  { %670 = vrot.lane.b32.xlu0 %v666_v34, %s1040_s0  ;;  %v663_v36 = vmul.f32 %v934_v35, %v653_v24 }
 0x39a   :  { %v667_v37 = vsub.f32 1.0, %v663_v36  ;;  %v665_v45 = vmul.f32 %v663_v36, %v578_v44 }
 0x39c   :  { %672 = vrot.lane.b32.xlu0 %v667_v37, %s1040_s0 }
 0x401   :  { %v681_v49 = vpop.permute.xlu1 %680 }
 0x405   :  { %v686_v50 = vpop.permute.xlu1 %685 }
 0x406   :  { %935 = vrcp.f32 %v686_v50 }
 0x407   :  { %937 = vrcp.f32 %v681_v49 }
 0x40a   :  { %v671_v42 = vpop.permute.xlu0 %670 }
 0x40b   :  { %v676_v43 = vmul.f32 %v671_v42, %v664_v41 }
 0x40d   :  { %887 = vmatprep.mubr.msk.f32.mxu1 %vm700_vm2, %v676_v43 }
 0x40e   :  { %v673_v46 = vpop.permute.xlu0 %672 }
 0x40f   :  { %v677_v47 = vmul.f32 %v673_v46, %v665_v45 }
 0x411   :  { %888 = vmatmul.mubr.msk.f32.vlgmr.msra.gmra.mxu1 %vm700_vm2, %v677_v47 }
 0x413   :  { %v936_v51 = vpop.eup %935 }
 0x414   :  { %v938_v52 = vpop.eup %937  ;;  %v691_v53 = vmul.f32 %v936_v51, %v576_v40 }
 0x415   :  { %v689_v56 = vmul.f32 %v938_v52, %v570_v38 }
 0x4d1   :  { %v889_v54 = vpop.f32.mrf.mxu1 }
 0x4d2   :  { %v783_v55 = vadd.f32 %v889_v54, %v691_v53 }
 0x4d3   :  { %v773_v57 = vpop.f32.mrf.mxu1 }
 0x4d4   :  { %v782_v58 = vadd.f32 %v773_v57, %v689_v56  ;;  %786 = vadd.xlane.f32.xlu1 %v783_v55 }
 0x4d6   :  { %784 = vadd.xlane.f32.xlu0 %v782_v58 }
 0x4e5   :  { %797 = vperm.xlu1 %906, %v1094_v16  }
 0x4ec   :  { %792 = vperm.xlu0 %905, %v1090_v9  }
 0x55d   :  { %v787_v59 = vpop.xlane.xlu1 %786 }
 0x55e   :  { %v789_v60 = vmul.f32 0.015625, %v787_v59 }
 0x55f   :  { %v785_v61 = vpop.xlane.xlu0 %784 }
 0x560   :  { %v803_v62 = vadd.f32 0.1, %v789_v60  ;;  %v788_v63 = vmul.f32 0.015625, %v785_v61 }
 0x561   :  { %v798_v1 = vpop.permute.xlu1 %797 }
 0x562   :  { %939 = vrcp.f32 %v803_v62  ;;  %v802_v0 = vadd.f32 0.1, %v788_v63  ;;  %v801_v3 = vmul.f32 %v798_v1, %v783_v55 }
 0x564   :  { %941 = vrcp.f32 %v802_v0 }
 0x567   :  { %v793_v2 = vpop.permute.xlu0 %792 }
 0x568   :  { %v800_v6 = vmul.f32 %v793_v2, %v782_v58 }
 0x56f   :  { %v940_v4 = vpop.eup %939 }
 0x570   :  { %v807_v5 = vmul.f32 %v940_v4, %v801_v3 }
 0x571   :  { %v942_v7 = vpop.eup %941 }
 0x572   :  { %809 = vst [vmem:[#allocation8 + $0x8] sm:$0xff] %v807_v5  ;;  %v805_v8 = vmul.f32 %v942_v7, %v800_v6 }
 0x574   :  { %808 = vst [vmem:[#allocation8] sm:$0xff] %v805_v8 }
 0x575   :  { %1014 = shalt.err (!%p1011_p5)
}
 0x576   :  { %821 = dma.vmem_to_hbm [thread:$0]  %s816_s12, 256, %s1110_s4, [#allocation4], %s1036_s5, %s1036_s5, %s1037_s6  }
 0x577   :  { %1027 = dma.done.wait [#allocation4], 256  }
 0x578   :  { %1028 = vsyncadd [#allocation4], 4294967040 }
 0x579   :  { %825 = vsyncpa [#allocation3], 1 }
 0x57a   :  { %826 = vsyncpa [#allocation6], 1 }
 0x57b   :  { %827 = vsyncpa [#allocation4], 1 }

</bundles_post_ra>
